<compile_context>
chip_gen: v5e
topology: v5e:2x2
jax: 0.10.0
libtpu: 0.0.40
codegen_flags: <defaults>
</compile_context>

<pallas_src>
import jax
import jax.numpy as jnp
from jax import lax
from jax.experimental import pallas as pl
from jax.experimental.pallas import tpu as pltpu


def _cdiv(a, b):
    return -(-a // b)


def _round_up(x, m):
    return ((x + m - 1) // m) * m


def _min_sublane(dtype):
    # f32 -> 8, bf16/f16 -> 16, int8/fp8 -> 32 (packed min-tile along sublanes).
    itemsize = jnp.dtype(dtype).itemsize
    return max(8, 32 // itemsize)


def _make_hinge_kernel(margin, tile_rows, valid_rows, needs_mask):
    # All closure values are Python scalars/bools -> become literals, not captured constants.
    margin = float(margin)
    tile_rows = int(tile_rows)
    valid_rows = int(valid_rows)
    needs_mask = bool(needs_mask)

    def kernel(pos_ref, neg_ref, out_ref):
        pos = pos_ref[...].astype(jnp.float32)
        neg = neg_ref[...]  # native dtype; comparisons below work for float or int targets

        # ATen hinge_embedding_loss elementwise terms.
        margin_clamp = jnp.maximum(margin - pos, 0.0)
        term = jnp.where(neg != 1, margin_clamp, 0.0) + jnp.where(neg != -1, pos, 0.0)

        if needs_mask:
            # Ragged tail: rows past `valid_rows` in the last grid step hold undefined data.
            row0 = pl.program_id(0) * tile_rows
            rows = row0 + lax.broadcasted_iota(jnp.int32, term.shape, 0)
            term = jnp.where(rows < valid_rows, term, 0.0)

        # One cross-sublane reduce per (large) tile; lane axis stays dense.
        out_ref[...] = jnp.sum(term, axis=0).reshape(1, 1, -1)

    return kernel


def hinge_embedding_loss(positive, negative, margin=1.0, *,
                         lanes=128,
                         target_tile_bytes=4 << 20,
                         vmem_limit_bytes=48 << 20):
    """Mean-reduced HingeEmbeddingLoss computed with a Pallas TPU kernel.

    `margin` is treated as a compile-time Python constant.
    """
    assert positive.shape == negative.shape, "positive/negative must have the same shape"
    total_elems = int(positive.size)
    assert total_elems > 0

    pos_item = jnp.dtype(positive.dtype).itemsize
    neg_item = jnp.dtype(negative.dtype).itemsize
    max_item = max(pos_item, neg_item)
    row_mult = max(_min_sublane(positive.dtype), _min_sublane(negative.dtype))

    # ---- canonicalize to a lane-dense 2-D (M, N) view without extra HBM passes --------------
    fast_2d = (
        positive.ndim == 2
        and positive.shape[-1] % lanes == 0
        # guard: even a minimum-height tile must fit the per-input tile budget
        and row_mult * positive.shape[-1] * max_item <= target_tile_bytes
    )
    if fast_2d:
        pos2d, neg2d = positive, negative
    else:
        pos_flat = positive.reshape(-1)   # reshape of contiguous data: free
        neg_flat = negative.reshape(-1)
        padded_total = _round_up(total_elems, lanes)
        if padded_total != total_elems:
            # Single merged pad per input; pad values (pos=0, neg=+1) contribute exactly 0 loss.
            pos_flat = jnp.pad(pos_flat, (0, padded_total - total_elems))
            neg_flat = jnp.pad(neg_flat, (0, padded_total - total_elems), constant_values=1)
        pos2d = pos_flat.reshape(-1, lanes)
        neg2d = neg_flat.reshape(-1, lanes)

    M, N = pos2d.shape

    # ---- tile sizing: ~target_tile_bytes per input per tile, dtype-aware row multiple --------
    rows_target = max(row_mult, target_tile_bytes // (N * max_item))
    rows_target -= rows_target % row_mult
    tile_rows = min(rows_target, _round_up(M, row_mult))
    if tile_rows >= M and M > row_mult:
        # Keep at least 2 grid steps when possible (megacore sharding on v7x).
        tile_rows = _round_up(_cdiv(M, 2), row_mult)
    tile_rows = int(max(row_mult, tile_rows))

    num_tiles = _cdiv(M, tile_rows)          # no row padding: ragged tail is masked in-kernel
    needs_mask = (M % tile_rows) != 0

    kernel = _make_hinge_kernel(margin, tile_rows, M, needs_mask)

    # TODO(synk): if an xprof trace shows exposed DMA on v7x, add pipeline_mode=pl.Buffered(3)
    # to the two input BlockSpecs (and budget the extra buffer in vmem_limit_bytes).
    partials = pl.pallas_call(
        kernel,
        out_shape=jax.ShapeDtypeStruct((num_tiles, 1, N), jnp.float32),
        grid_spec=pltpu.PrefetchScalarGridSpec(
            num_scalar_prefetch=0,
            grid=(num_tiles,),
            in_specs=[
                pl.BlockSpec((tile_rows, N), lambda i: (i, 0)),
                pl.BlockSpec((tile_rows, N), lambda i: (i, 0)),
            ],
            out_specs=pl.BlockSpec((1, 1, N), lambda i: (i, 0, 0)),
        ),
        compiler_params=pltpu.CompilerParams(
            # Each output block is written exactly once -> fully parallel grid.
            dimension_semantics=("parallel",),
            vmem_limit_bytes=int(vmem_limit_bytes),
        ),
    )(pos2d, neg2d)

    # Tiny final reduction (num_tiles * N floats) + mean over the ORIGINAL element count.
    return jnp.sum(partials) / jnp.float32(total_elems)


def _reference_loss(positive, negative, margin=1.0):
    pos = positive.astype(jnp.float32)
    neg = negative
    margin_clamp = jnp.maximum(jnp.float32(margin) - pos, 0.0)
    out = jnp.where(neg != 1, margin_clamp, 0.0) + jnp.where(neg != -1, pos, 0.0)
    return jnp.mean(out)


if __name__ == "__main__":
    key = jax.random.PRNGKey(0)
    k1, k2, k3, k4, k5, k6 = jax.random.split(key, 6)

    # Test 1: lane-aligned 2-D input (typical ranking-score batch) -> 2-D fast path, 2 grid steps.
    M, N = 16, 128
    positive = jax.random.normal(k1, (M, N), dtype=jnp.float32)
    negative = jnp.where(jax.random.bernoulli(k2, 0.5, (M, N)),
                         jnp.float32(1.0), jnp.float32(-1.0))
    loss = hinge_embedding_loss(positive, negative, margin=1.0)
    jax.block_until_ready(loss)
    ref = _reference_loss(positive, negative, margin=1.0)
    assert jnp.allclose(loss, ref, rtol=1e-5, atol=1e-5), (loss, ref)

    # Test 2: awkward shape exercising flatten + single merged pad + in-kernel tail mask.
    positive2 = jax.random.normal(k3, (7, 50), dtype=jnp.float32)
    negative2 = jnp.where(jax.random.bernoulli(k4, 0.5, (7, 50)),
                          jnp.float32(1.0), jnp.float32(-1.0))
    loss2 = hinge_embedding_loss(positive2, negative2, margin=1.0)
    jax.block_until_ready(loss2)
    ref2 = _reference_loss(positive2, negative2, margin=1.0)
    assert jnp.allclose(loss2, ref2, rtol=1e-5, atol=1e-5), (loss2, ref2)

    # Test 3: 3-D input (flatten path, no pad needed) with a non-default margin.
    positive3 = jax.random.normal(k5, (2, 4, 16), dtype=jnp.float32)
    negative3 = jnp.where(jax.random.bernoulli(k6, 0.5, (2, 4, 16)),
                          jnp.float32(1.0), jnp.float32(-1.0))
    loss3 = hinge_embedding_loss(positive3, negative3, margin=0.5)
    jax.block_until_ready(loss3)
    ref3 = _reference_loss(positive3, negative3, margin=0.5)
    assert jnp.allclose(loss3, ref3, rtol=1e-5, atol=1e-5), (loss3, ref3)

    print("KERNEL_OK")
</pallas_src>

<mosaic_0001>
module attributes {stable_mosaic.version = 11 : i64} {
  func.func @kernel(%arg0: i32, %arg1: memref<8x128xf32, #tpu.memory_space<vmem>>, %arg2: memref<8x128xf32, #tpu.memory_space<vmem>>, %arg3: memref<1x1x128xf32, #tpu.memory_space<vmem>>) attributes {dimension_semantics = [#tpu.dimension_semantics<parallel>], iteration_bounds = array<i64: 2>, scalar_prefetch = 0 : i64, scratch_operands = 0 : i64, tpu.core_type = #tpu.core_type<tc>, window_params = [{transform_indices = @transform_0, window_bounds = array<i64: 8, 128>}, {transform_indices = @transform_1, window_bounds = array<i64: 8, 128>}, {transform_indices = @transform_2, window_bounds = array<i64: 1, 1, 128>}]} {
    %c0 = arith.constant 0 : index
    %c0_0 = arith.constant 0 : index
    %0 = vector.load %arg1[%c0, %c0_0] : memref<8x128xf32, #tpu.memory_space<vmem>>, vector<8x128xf32>
    %c0_1 = arith.constant 0 : index
    %c0_2 = arith.constant 0 : index
    %1 = vector.load %arg2[%c0_1, %c0_2] : memref<8x128xf32, #tpu.memory_space<vmem>>, vector<8x128xf32>
    %cst = arith.constant 1.000000e+00 : f32
    %2 = vector.broadcast %cst : f32 to vector<8x128xf32>
    %3 = arith.subf %2, %0 : vector<8x128xf32>
    %cst_3 = arith.constant 0.000000e+00 : f32
    %4 = vector.broadcast %cst_3 : f32 to vector<8x128xf32>
    %5 = arith.maximumf %3, %4 : vector<8x128xf32>
    %cst_4 = arith.constant 1.000000e+00 : f32
    %6 = vector.broadcast %cst_4 : f32 to vector<8x128xf32>
    %7 = arith.cmpf one, %1, %6 : vector<8x128xf32>
    %cst_5 = arith.constant 0.000000e+00 : f32
    %8 = vector.broadcast %cst_5 : f32 to vector<8x128xf32>
    %9 = arith.select %7, %5, %8 : vector<8x128xi1>, vector<8x128xf32>
    %cst_6 = arith.constant -1.000000e+00 : f32
    %10 = vector.broadcast %cst_6 : f32 to vector<8x128xf32>
    %11 = arith.cmpf one, %1, %10 : vector<8x128xf32>
    %cst_7 = arith.constant 0.000000e+00 : f32
    %12 = vector.broadcast %cst_7 : f32 to vector<8x128xf32>
    %13 = arith.select %11, %0, %12 : vector<8x128xi1>, vector<8x128xf32>
    %14 = arith.addf %9, %13 : vector<8x128xf32>
    %cst_8 = arith.constant dense<0.000000e+00> : vector<128xf32>
    %15 = vector.multi_reduction <add>, %14, %cst_8 [0] : vector<8x128xf32> to vector<128xf32>
    %16 = vector.shape_cast %15 : vector<128xf32> to vector<1x1x128xf32>
    %c0_9 = arith.constant 0 : index
    %c0_10 = arith.constant 0 : index
    %c0_11 = arith.constant 0 : index
    %17 = vector.load %arg3[%c0_9, %c0_10, %c0_11] : memref<1x1x128xf32, #tpu.memory_space<vmem>>, vector<1x1x128xf32>
    tpu.vector_store %arg3[%c0_9, %c0_10, %c0_11], %16 {strides = array<i32>} : memref<1x1x128xf32, #tpu.memory_space<vmem>>, vector<1x1x128xf32>,
    return
  }
  func.func @transform_0(%arg0: i32) -> (i32, i32) {
    %c0_i32 = arith.constant 0 : i32
    %c0_i32_0 = arith.constant 0 : i32
    return %arg0, %c0_i32 : i32, i32
  }
  func.func @transform_1(%arg0: i32) -> (i32, i32) {
    %c0_i32 = arith.constant 0 : i32
    %c0_i32_0 = arith.constant 0 : i32
    return %arg0, %c0_i32 : i32, i32
  }
  func.func @transform_2(%arg0: i32) -> (i32, i32, i32) {
    %c0_i32 = arith.constant 0 : i32
    %c0_i32_0 = arith.constant 0 : i32
    %c0_i32_1 = arith.constant 0 : i32
    return %arg0, %c0_i32, %c0_i32_0 : i32, i32, i32
  }
}

</mosaic_0001>

<bundles_post_ra>
// kernel: tpu_custom_call.1
= control target key start
LH: loop header
LB: loop body
LE: loop exit
PB: predicated region body
PF: predicated region fallthrough
CT: control target
= control target key end

     0   :  { %7 = vsyncpa [#allocation3], 0  ;;  %s688_s0 = inlined_call_operand.hbm [shape: f32[16,128], index: 0, kind: input, shape index: {}]   ;;  %s689_s1 = inlined_call_operand.hbm [shape: f32[16,128], index: 1, kind: input, shape index: {}]   ;;  %s690_s2 = inlined_call_operand.hbm [shape: f32[2,1,128], index: 2, kind: output, shape index: {}]  }
   0x1   :  { %9 = vsyncpa [#allocation3 + $0x1], 0 }
   0x2   :  { %10 = vsyncpa [#allocation6], 0 }
   0x3   :  { %12 = vsyncpa [#allocation6 + $0x1], 0 }
   0x4   :  { %13 = vsyncpa [#allocation4], 0 }
   0x5   :  { %15 = vsyncpa [#allocation4 + $0x1], 0  ;;  %s527_s9 = smov 0   ;;  %s529_s10 = smov 0  }
   0x6   :  { %s531_s11 = smov 0   ;;  %s533_s12 = smov 0  }
   0x7 LB: > { %s548_s13 = sadd.s32 4294967295, %s510_s12   ;;  %s317_s14 = sadd.s32 4294967294, %s510_s12   ;;  %s510_s12 = sphi %s533_s12, %s701_s12   ;;  %s506_s11 = sphi %s531_s11, %s700_s11   ;;  %s502_s10 = sphi %s529_s10, %s699_s10   ;;  %s498_s9 = sphi %s527_s9, %s698_s9  }
   0x8   : > { %s552_s15 = sadd.s32 1, %s510_s12   ;;  %s28_s16 = sadd.s32 1, %s506_s11 }
   0x9   : > { %s25_s17 = ssub.s32 %s510_s12, %s552_s15  ;;  %p35_p0 = scmp.ne.s32.totalorder %s506_s11, %s502_s10 }
   0xa   : > { %p26_p1 = scmp.eq.s32.totalorder %s25_s17, 0  ;;  %p36_p2 = scmp.eq.s32.totalorder %s510_s12, 0 }
   0xb   : > { %p41_p3 = scmp.ne.s32.totalorder %s502_s10, %s498_s9  ;;  %p42_p4 = scmp.eq.s32.totalorder %s548_s13, 0 }
   0xc   : > { %s564_s18 = scalar_select %p26_p1, %s506_s11, %s28_s16  }
   0xd   : > { %p566_p5 = por %p36_p2, %p35_p0  ;;  %p570_p6 = por %p42_p4, %p41_p3 }
   0xe   : > { %p91_p7 = scmp.eq.s32.totalorder %s548_s13, 1  ;;  %p97_p8 = scmp.eq.s32.totalorder %s317_s14, 1 }
   0xf   : > { %p346_p10 = scmp.lt.s32.totalorder %s510_s12, 2  ;;  %s586_s23 = sand.u32 1, %s506_s11  }
  0x10   : > { %p577_p11 = por %p91_p7, %p35_p0  ;;  %p581_p12 = por %p97_p8, %p41_p3 }
  0x11   : > { %s321_s24 = sshll.u32 %s510_s12, 3  ;;  %s320_s25 = sshll.u32 %s586_s23, 3 }
  0x12   : > { %s125_s28 = scalar_lea.hbm %s688_s0, %s321_s24  ;;  %s121_s30 = scalar_lea.vmem [#allocation2], %s320_s25 }
  0x13   : > { %s127_s29 = sshll.u32 %s125_s28, 4  ;;  %s129_s3 = sshll.u32 %s121_s30, 4  ;;  %s128_s29 = int_to_ptr.hbm [resolvable:$true] %s127_s29  ;;  %s130_s3 = int_to_ptr.vmem [resolvable:$true] %s129_s3 }
  0x14   : > { %p595_p13 = pnand %p346_p10, %p566_p5  ;;  %p324_p0 = scmp.ge.s32.totalorder %s510_s12, 1 }
  0x15   : > { %p153_p1 = scmp.lt.s32.totalorder %s510_s12, 3  ;;  %s118_s5 = scalar_lea.sflag [#allocation3], %s586_s23 }
  0x16   : > { %s380_s6 = sshra.s32 %s128_s29, 4  ;;  %p384_p3 = pneg %p595_p13  ;;  %s381_s6 = int_to_ptr.hbm [resolvable:$true] %s380_s6 }
  0x17   : > { %s382_s7 = scalar_lea.hbm %s381_s6, 8  ;;  %s387_s16 = scalar_lea.hbm %s688_s0, 16 }
  0x18   : > { %p383_p2 = scmp.ne.s32.totalorder %s381_s6, %s382_s7  ;;  %p388_p5 = scmp.lt.s32.totalorder %s381_s6, %s688_s0 }
  0x19   : > { %p389_p8 = scmp.lt.s32.totalorder %s387_s16, %s382_s7 }
  0x1a   : > { %p385_p4 = pnand %p384_p3, %p383_p2 }
  0x1b   : > { %p390_p10 = por %p389_p8, %p388_p5 }
  0x1c   : > { %p386_p7 = pneg %p385_p4 }
  0x1e   : > { %p391_p9 = pnand %p390_p10, %p386_p7 }
  0x20   : > { %394 = shalt.err (!%p391_p9)
}
  0x21   : > { %338 = dma.hbm_to_vmem [thread:$0]  (!%p595_p13), %s128_s29, 128, %s130_s3, %s118_s5  }
  0x22   : > { %p619_p2 = pnand %p324_p0, %p153_p1  ;;  %s144_s30 = scalar_lea.hbm %s689_s1, %s321_s24 }
  0x23   : > { %s146_s6 = sshll.u32 %s144_s30, 4  ;;  %s140_s7 = scalar_lea.vmem [#allocation5], %s320_s25  ;;  %s147_s6 = int_to_ptr.hbm [resolvable:$true] %s146_s6 }
  0x24   : > { %s148_s8 = sshll.u32 %s140_s7, 4  ;;  %s137_s14 = scalar_lea.sflag [#allocation6], %s586_s23  ;;  %s149_s8 = int_to_ptr.vmem [resolvable:$true] %s148_s8 }
  0x25   : > { %s410_s16 = sshra.s32 %s147_s6, 4  ;;  %s417_s5 = scalar_lea.hbm %s689_s1, 16  ;;  %s411_s16 = int_to_ptr.hbm [resolvable:$true] %s410_s16 }
  0x26   : > { %s412_s17 = scalar_lea.hbm %s411_s16, 8  ;;  %p418_p4 = scmp.lt.s32.totalorder %s411_s16, %s689_s1 }
  0x27   : > { %p413_p9 = scmp.ne.s32.totalorder %s411_s16, %s412_s17  ;;  %p419_p7 = scmp.lt.s32.totalorder %s417_s5, %s412_s17 }
  0x29   : > { %p415_p0 = pnand %p413_p9, %p384_p3  ;;  %p420_p5 = por %p419_p7, %p418_p4 }
  0x2b   : > { %p416_p1 = pneg %p415_p0 }
  0x2d   : > { %p421_p8 = pnand %p420_p5, %p416_p1 }
  0x2f   : > { %424 = shalt.err (!%p421_p8)
}
  0x30   : > { %341 = dma.hbm_to_vmem [thread:$0]  (!%p595_p13), %s147_s6, 128, %s149_s8, %s137_s14  }
  0x31   : > { %157 = sbr.rel (%p619_p2) target bundleno = 80 (0x50), region = 28  ;;  %s641_s23 = sand.u32 (!%p619_p2), 1, %s502_s10  }
  0x32   : > { %s325_s25 = sshll.u32 (!%p619_p2), %s641_s23, 3  ;;  %s160_s27 = scalar_lea.sflag (!%p619_p2), [#allocation3], %s641_s23 }
  0x33   : > { %s163_s28 = scalar_lea.vmem (!%p619_p2), [#allocation2], %s325_s25 }
  0x36   : > { %485 = dma.done.wait (%p570_p6), %s160_s27, 128  }
  0x37   : > { %487 = vsyncadd (%p570_p6), %s160_s27, 4294967168  ;;  %s170_s4 = scalar_lea.sflag [#allocation6], %s641_s23  ;;  %s173_s30 = scalar_lea.vmem [#allocation5], %s325_s25 }
  0x38   : > { %489 = dma.done.wait (%p570_p6), %s170_s4, 128  }
  0x39   : > { %491 = vsyncadd (%p570_p6), %s170_s4, 4294967168  ;;  %v199_v0 = vld [vmem:[%s163_s28] sm:$0xff]  ;;  %v200_v1 = vld [vmem:[%s173_s30] sm:$0xff]  ;;  %s224_s20 = scalar_lea.hbm %s690_s2, %s548_s13  ;;  %s198_s7 = scalar_lea.vmem [#allocation7], %s641_s23 }
  0x3a   : > { %v201_v2 = vsub.f32 1.0, %v199_v0  ;;  %vm205_vm0 = vcmp.ne.f32.partialorder %v200_v1, -1.0  ;;  %vm203_vm1 = vcmp.ne.f32.partialorder %v200_v1, 1.0  ;;  %s226_s8 = sshll.u32 %s198_s7, 4  ;;  %s228_s14 = sshll.u32 %s224_s20, 4  ;;  %s227_s8 = int_to_ptr.vmem [resolvable:$true] %s226_s8  ;;  %s229_s14 = int_to_ptr.hbm [resolvable:$true] %s228_s14 }
  0x3b   : > { %v206_v4 = vsel %vm205_vm0, %v199_v0, 0.0  ;;  %s216_s16 = scalar_lea.sflag [#allocation4], %s641_s23  ;;  %s454_s17 = sshra.s32 %s229_s14, 4  ;;  %s455_s17 = int_to_ptr.hbm [resolvable:$true] %s454_s17 }
  0x3c   : > { %v202_v3 = vmax.f32 %v201_v2, 0.0  ;;  %s456_s29 = scalar_lea.hbm %s455_s17, 1  ;;  %s460_s13 = scalar_lea.hbm %s690_s2, 2 }
  0x3d   : > { %p457_p6 = scmp.ne.s32.totalorder %s455_s17, %s456_s29  ;;  %p461_p10 = scmp.lt.s32.totalorder %s455_s17, %s690_s2 }
  0x3e   : > { %v204_v5 = vsel %vm203_vm1, %v202_v3, 0.0  ;;  %p462_p2 = scmp.lt.s32.totalorder %s460_s13, %s456_s29 }
  0x3f   : > { %v207_v6 = vadd.f32 %v206_v4, %v204_v5  ;;  %p458_p13 = pnand %p457_p6, %p577_p11 }
  0x40   : > { %p463_p9 = por %p462_p2, %p461_p10 }
  0x41   : > { %v208_v7 = vrot.slane %v207_v6, 4  ;;  %p459_p3 = pneg %p458_p13 }
  0x43   : > { %v209_v8 = vadd.f32 %v208_v7, %v207_v6  ;;  %p464_p0 = pnand %p463_p9, %p459_p3 }
  0x45   : > { %v210_v9 = vrot.slane %v209_v8, 2 }
  0x47   : > { %v211_v10 = vadd.f32 %v210_v9, %v209_v8 }
  0x49   : > { %v212_v11 = vrot.slane %v211_v10, 1 }
  0x4b   : > { %v213_v12 = vadd.f32 %v212_v11, %v211_v10 }
  0x4d   : > { %214 = vst [vmem:[%s198_s7] sm:$0x1] %v213_v12 }
  0x4e   : > { %467 = shalt.err (!%p464_p0)
}
  0x4f   : > { %333 = dma.vmem_to_hbm [thread:$0]  (%p577_p11), %s227_s8, 16, %s229_s14, %s216_s16  }
  0x50 PF: > { %s240_s23 = sand.u32 1, %s498_s9   ;;  %p697_p1 = scmp.ge.s32.totalorder %s510_s12, 2 }
  0x51   : > { %s241_s25 = scalar_lea.sflag [#allocation4], %s240_s23 }
  0x52   : > { %p343_p4 = pnand %p697_p1, %p581_p12 }
  0x54   : > { %p344_p7 = pneg %p343_p4 }
  0x56   : > { %493 = dma.done.wait (%p344_p7), %s241_s25, 16  }
  0x57   : > { %495 = vsyncadd (%p344_p7), %s241_s25, 4294967280  ;;  %p18_p5 = scmp.ge.s32.totalorder %s552_s15, 4   ;;  %s698_s9 = smov %s502_s10 }
  0x58   : > { %s699_s10 = smov %s506_s11  ;;  %s700_s11 = smov %s564_s18 }
  0x59   : > { %s701_s12 = smov %s552_s15  ;;  %20 = sbr.rel (!%p18_p5) target bundleno = 7 (0x7), region = 86 }
  0x5e   :  { %246 = vsyncpa [#allocation3], 1 }
  0x5f   :  { %248 = vsyncpa [#allocation3 + $0x1], 1 }
  0x60   :  { %249 = vsyncpa [#allocation6], 1 }
  0x61   :  { %251 = vsyncpa [#allocation6 + $0x1], 1 }
  0x62   :  { %252 = vsyncpa [#allocation4], 1 }
  0x63   :  { %254 = vsyncpa [#allocation4 + $0x1], 1 }

</bundles_post_ra>
